<compile_context>
chip_gen: v5e
topology: v5e:2x2
jax: 0.10.0
libtpu: 0.0.40
codegen_flags: <defaults>
</compile_context>

<pallas_src>
import jax
import jax.numpy as jnp
from jax.experimental import pallas as pl
from jax.experimental.pallas import tpu as pltpu


# ----------------------------------------------------------------------------
# Kernels
# ----------------------------------------------------------------------------
def _fused_ca_kernel(x_ref, w1_ref, b1_ref, w2_ref, b2_ref, o_ref):
    """Single pass: pool over full HW, SE math, scale.  Block = (Bt, C, HW)."""
    xb = x_ref[...].astype(jnp.float32)                       # (Bt, C, HW)
    pooled = jnp.sum(xb, axis=-1)                              # (Bt, C); 1/HW in w1
    # Squeeze 1x1 conv as VPU broadcast-multiply + cross-lane (XLU) reduce.
    h = jnp.sum(pooled[:, None, :] * w1_ref[...][None, :, :], axis=-1)   # (Bt, C_sq)
    h = jnp.maximum(h + b1_ref[...], 0.0)
    # Excite 1x1 conv + sigmoid (sigmoid goes to the EUP slot).
    y = jnp.sum(h[:, None, :] * w2_ref[...][None, :, :], axis=-1)        # (Bt, C)
    y = jax.nn.sigmoid(y + b2_ref[...])
    o_ref[...] = (xb * y[:, :, None]).astype(o_ref.dtype)


def _make_pool_se_kernel(HW, t_hw, needs_mask):
    """Pass 1 of the streaming path: accumulate channel sums over hw tiles,
    then run the tiny SE math on the last tile.  Block = (1, C, t_hw)."""

    def kernel(x_ref, w1_ref, b1_ref, w2_ref, b2_ref, y_ref, acc_ref):
        s = pl.program_id(1)

        @pl.when(s == 0)
        def _init():
            acc_ref[...] = jnp.zeros_like(acc_ref)

        xb = x_ref[...].astype(jnp.float32)                    # (1, C, t_hw)
        if needs_mask:
            # Last hw tile is partial: its OOB lanes hold garbage -> mask them.
            lane = jax.lax.broadcasted_iota(jnp.int32, xb.shape, 2)
            xb = jnp.where(lane + s * t_hw < HW, xb, 0.0)
        acc_ref[...] += jnp.sum(xb, axis=-1)                   # (1, C)

        @pl.when(s == pl.num_programs(1) - 1)
        def _finish():
            pooled = acc_ref[...]                              # (1, C); 1/HW in w1
            h = jnp.sum(pooled[:, None, :] * w1_ref[...][None, :, :], axis=-1)
            h = jnp.maximum(h + b1_ref[...], 0.0)
            y = jnp.sum(h[:, None, :] * w2_ref[...][None, :, :], axis=-1)
            y = jax.nn.sigmoid(y + b2_ref[...])
            y_ref[...] = y[..., None]                          # (1, C, 1) f32

    return kernel


def _scale_kernel(x_ref, y_ref, o_ref):
    """Pass 2 of the streaming path: out = x * y, broadcast over hw lanes."""
    xb = x_ref[...].astype(jnp.float32)                        # (1, C, t_hw)
    o_ref[...] = (xb * y_ref[...]).astype(o_ref.dtype)


# ----------------------------------------------------------------------------
# Generation-aware tuning
# ----------------------------------------------------------------------------
def _tpu_tuning():
    vmem_cap = 64 << 20   # conservative default (v7x-class)
    try:
        info = pltpu.get_tpu_info()
        vmem_cap = int(getattr(info, "vmem_capacity_bytes", vmem_cap))
    except Exception:
        pass
    if vmem_cap <= (64 << 20):
        # v7x: 64 MiB VMEM / TC, 2 TCs -> want >=4 grid steps, keep blocks
        # <= ~6 MiB and leave ample headroom for Mosaic internal scratch.
        return {"target_block_bytes": 6 << 20, "vmem_limit_cap": 48 << 20,
                "min_steps": 4}
    # v5e / v6e: 128 MiB VMEM, single TC -> larger blocks amortize the
    # ~0.35 us/step overhead; 2 steps suffice for double-buffer overlap.
    return {"target_block_bytes": 12 << 20, "vmem_limit_cap": 96 << 20,
            "min_steps": 2}


def _pick_batch_tile(B, per_batch_bytes, *, target_bytes, min_steps,
                     min_block_bytes=1 << 20):
    """Largest batch tile whose block fits target_bytes; shrink (halving) only
    to reach min_steps grid steps, and never below ~1 MiB blocks unless the
    whole tensor is tiny anyway."""
    bt = int(max(1, min(B, target_bytes // max(per_batch_bytes, 1))))
    total_bytes = B * per_batch_bytes
    while bt > 1 and pl.cdiv(B, bt) < min_steps:
        nxt = max(1, bt // 2)
        if (nxt * per_batch_bytes < min_block_bytes
                and total_bytes > min_steps * min_block_bytes):
            break
        bt = nxt
    return bt


def _pick_hw_tile(HW, C, target_bytes):
    """Spatial tile (multiple of 128) so a (1, C, t_hw) f32 slab fits the block
    budget; fall back to the full HW when it already fits."""
    t = (target_bytes // (C * 4)) // 128 * 128
    t = max(128, int(t))
    if t >= HW:
        return HW
    return t


def _vmem_limit(block_f32_bytes, weight_bytes, cap):
    # double-buffered in + out blocks, ~2 block-sized f32 temporaries, weights,
    # plus fixed headroom for Mosaic scratch/semaphores.
    need = 6 * block_f32_bytes + weight_bytes + (4 << 20)
    return int(min(max(need, 16 << 20), cap))


# ----------------------------------------------------------------------------
# Wrapper
# ----------------------------------------------------------------------------
def channel_attention(x, w1, b1, w2, b2, *, max_block_bytes=None):
    """x: (B, C, H, W). w1: (C_sq, C), b1: (C_sq,), w2: (C, C_sq), b2: (C,).
    I/O dtype is preserved (e.g. bf16 halves HBM traffic); math is f32."""
    B, C, H, W = x.shape
    C_sq = w1.shape[0]
    HW = H * W

    tune = _tpu_tuning()
    target = int(max_block_bytes) if max_block_bytes is not None else tune["target_block_bytes"]
    vmem_cap = tune["vmem_limit_cap"]
    min_steps = tune["min_steps"]

    out_dtype = x.dtype
    x_flat = x.reshape(B, C, HW)          # free reshape; no pad, no dtype copy

    # Fold the 1/HW mean normalization into the squeeze weight.
    w1_eff = (w1.astype(jnp.float32) * (1.0 / HW))
    w2_f = w2.astype(jnp.float32)
    b1_2d = b1.reshape(1, C_sq).astype(jnp.float32)
    b2_2d = b2.reshape(1, C).astype(jnp.float32)
    weight_bytes = 4 * (C_sq * C + C_sq + C * C_sq + C)

    per_batch_f32 = C * HW * 4            # budget in f32-equivalent bytes

    # TODO(synk): optionally alias input/output (input_output_aliases) when the
    # caller no longer needs x; skipped because the tests reuse x.

    if per_batch_f32 <= target:
        # -------- fused single-pass path: block = (Bt, C, HW) --------
        Bt = _pick_batch_tile(B, per_batch_f32, target_bytes=target,
                              min_steps=min_steps)
        n_b = pl.cdiv(B, Bt)
        vmem_limit = _vmem_limit(Bt * per_batch_f32, weight_bytes, vmem_cap)

        out_flat = pl.pallas_call(
            _fused_ca_kernel,
            out_shape=jax.ShapeDtypeStruct((B, C, HW), out_dtype),
            grid_spec=pltpu.PrefetchScalarGridSpec(
                num_scalar_prefetch=0,
                grid=(n_b,),
                in_specs=[
                    pl.BlockSpec((Bt, C, HW), lambda b: (b, 0, 0)),
                    pl.BlockSpec((C_sq, C), lambda b: (0, 0)),
                    pl.BlockSpec((1, C_sq), lambda b: (0, 0)),
                    pl.BlockSpec((C, C_sq), lambda b: (0, 0)),
                    pl.BlockSpec((1, C), lambda b: (0, 0)),
                ],
                out_specs=pl.BlockSpec((Bt, C, HW), lambda b: (b, 0, 0)),
            ),
            compiler_params=pltpu.CompilerParams(
                dimension_semantics=("parallel",),
                vmem_limit_bytes=vmem_limit),
        )(x_flat, w1_eff, b1_2d, w2_f, b2_2d)
    else:
        # -------- two-pass streaming path (large H*W) --------
        t_hw = _pick_hw_tile(HW, C, target)
        n_hw = pl.cdiv(HW, t_hw)
        needs_mask = (HW % t_hw) != 0
        block_f32 = C * t_hw * 4

        # Pass 1: pooled channel sums + SE math -> y of shape (B, C, 1) f32.
        y = pl.pallas_call(
            _make_pool_se_kernel(HW, t_hw, needs_mask),
            out_shape=jax.ShapeDtypeStruct((B, C, 1), jnp.float32),
            grid_spec=pltpu.PrefetchScalarGridSpec(
                num_scalar_prefetch=0,
                grid=(B, n_hw),
                in_specs=[
                    pl.BlockSpec((1, C, t_hw), lambda b, s: (b, 0, s)),
                    pl.BlockSpec((C_sq, C), lambda b, s: (0, 0)),
                    pl.BlockSpec((1, C_sq), lambda b, s: (0, 0)),
                    pl.BlockSpec((C, C_sq), lambda b, s: (0, 0)),
                    pl.BlockSpec((1, C), lambda b, s: (0, 0)),
                ],
                out_specs=pl.BlockSpec((1, C, 1), lambda b, s: (b, 0, 0)),
                scratch_shapes=[pltpu.VMEM((1, C), jnp.float32)],
            ),
            compiler_params=pltpu.CompilerParams(
                dimension_semantics=("parallel", "arbitrary"),
                vmem_limit_bytes=_vmem_limit(block_f32, weight_bytes, vmem_cap)),
        )(x_flat, w1_eff, b1_2d, w2_f, b2_2d)

        # Pass 2: out = x * y, streamed in (1, C, t_hw) tiles.
        out_flat = pl.pallas_call(
            _scale_kernel,
            out_shape=jax.ShapeDtypeStruct((B, C, HW), out_dtype),
            grid_spec=pltpu.PrefetchScalarGridSpec(
                num_scalar_prefetch=0,
                grid=(B, n_hw),
                in_specs=[
                    pl.BlockSpec((1, C, t_hw), lambda b, s: (b, 0, s)),
                    pl.BlockSpec((1, C, 1), lambda b, s: (b, 0, 0)),
                ],
                out_specs=pl.BlockSpec((1, C, t_hw), lambda b, s: (b, 0, s)),
            ),
            compiler_params=pltpu.CompilerParams(
                dimension_semantics=("parallel", "parallel"),
                vmem_limit_bytes=_vmem_limit(block_f32, C * 4, vmem_cap)),
        )(x_flat, y)

    return out_flat.reshape(B, C, H, W)


# ----------------------------------------------------------------------------
# Reference & tests
# ----------------------------------------------------------------------------
def reference(x, w1, b1, w2, b2):
    xf = x.astype(jnp.float32)
    pooled = jnp.mean(xf, axis=(2, 3))                       # (B, C)
    h = jnp.maximum(pooled @ w1.T + b1, 0.0)                 # (B, C_sq)
    y = jax.nn.sigmoid(h @ w2.T + b2)                        # (B, C)
    return (xf * y[:, :, None, None]).astype(x.dtype)


if __name__ == "__main__":
    # num_feat=32, squeeze_factor=4 (module default is 16; any factor works).
    C = 32
    squeeze_factor = 4
    C_sq = C // squeeze_factor

    key = jax.random.PRNGKey(0)
    kx, k1, k2, k3, k4, kx2, kx3 = jax.random.split(key, 7)
    # Conv2d(num_feat, num_feat//sq, 1) weight (C_sq, C, 1, 1) -> (C_sq, C)
    w1 = jax.random.normal(k1, (C_sq, C), dtype=jnp.float32) * 0.1
    b1 = jax.random.normal(k2, (C_sq,), dtype=jnp.float32) * 0.1
    # Conv2d(num_feat//sq, num_feat, 1) weight (C, C_sq, 1, 1) -> (C, C_sq)
    w2 = jax.random.normal(k3, (C, C_sq), dtype=jnp.float32) * 0.1
    b2 = jax.random.normal(k4, (C,), dtype=jnp.float32) * 0.1

    # Case 1: fused path, lane-aligned spatial dim (H*W = 256).
    x = jax.random.normal(kx, (2, C, 16, 16), dtype=jnp.float32)
    out = jax.block_until_ready(channel_attention(x, w1, b1, w2, b2))
    ref = reference(x, w1, b1, w2, b2)
    assert jnp.allclose(out, ref, atol=1e-5, rtol=1e-5), "mismatch (aligned case)"

    # Case 2: fused path, unaligned H*W = 100 -- no wrapper padding / slicing;
    # the trailing <128-lane column is a masked store inside the kernel.
    x2 = jax.random.normal(kx2, (3, C, 10, 10), dtype=jnp.float32)
    out2 = jax.block_until_ready(channel_attention(x2, w1, b1, w2, b2))
    ref2 = reference(x2, w1, b1, w2, b2)
    assert jnp.allclose(out2, ref2, atol=1e-5, rtol=1e-5), "mismatch (unaligned case)"

    # Case 3: force the two-pass streaming path (spatial tiling, H*W = 400 ->
    # hw tiles of 128 with a masked partial last tile).
    x3 = jax.random.normal(kx3, (2, C, 20, 20), dtype=jnp.float32)
    out3 = jax.block_until_ready(
        channel_attention(x3, w1, b1, w2, b2, max_block_bytes=C * 128 * 4))
    ref3 = reference(x3, w1, b1, w2, b2)
    assert jnp.allclose(out3, ref3, atol=1e-5, rtol=1e-5), "mismatch (two-pass case)"

    # Case 4: bf16 I/O path (half the HBM bytes for this bandwidth-bound op).
    x4 = x.astype(jnp.bfloat16)
    out4 = jax.block_until_ready(channel_attention(x4, w1, b1, w2, b2))
    ref4 = reference(x4, w1, b1, w2, b2)
    assert jnp.allclose(out4.astype(jnp.float32), ref4.astype(jnp.float32),
                        atol=2e-2, rtol=2e-2), "mismatch (bf16 case)"

    print("KERNEL_OK")
</pallas_src>

<mosaic_0001>
module attributes {stable_mosaic.version = 11 : i64} {
  func.func @_fused_ca_kernel(%arg0: i32, %arg1: memref<1x32x256xf32, #tpu.memory_space<vmem>>, %arg2: memref<8x32xf32, #tpu.memory_space<vmem>>, %arg3: memref<1x8xf32, #tpu.memory_space<vmem>>, %arg4: memref<32x8xf32, #tpu.memory_space<vmem>>, %arg5: memref<1x32xf32, #tpu.memory_space<vmem>>, %arg6: memref<1x32x256xf32, #tpu.memory_space<vmem>>) attributes {dimension_semantics = [#tpu.dimension_semantics<parallel>], iteration_bounds = array<i64: 2>, scalar_prefetch = 0 : i64, scratch_operands = 0 : i64, tpu.core_type = #tpu.core_type<tc>, window_params = [{transform_indices = @transform_0, window_bounds = array<i64: 1, 32, 256>}, {pipeline_mode = #tpu.pipeline_mode<synchronous>, transform_indices = @transform_1, window_bounds = array<i64: 8, 32>}, {pipeline_mode = #tpu.pipeline_mode<synchronous>, transform_indices = @transform_2, window_bounds = array<i64: 1, 8>}, {pipeline_mode = #tpu.pipeline_mode<synchronous>, transform_indices = @transform_3, window_bounds = array<i64: 32, 8>}, {pipeline_mode = #tpu.pipeline_mode<synchronous>, transform_indices = @transform_4, window_bounds = array<i64: 1, 32>}, {transform_indices = @transform_5, window_bounds = array<i64: 1, 32, 256>}]} {
    %c0 = arith.constant 0 : index
    %c0_0 = arith.constant 0 : index
    %c0_1 = arith.constant 0 : index
    %0 = vector.load %arg1[%c0, %c0_0, %c0_1] : memref<1x32x256xf32, #tpu.memory_space<vmem>>, vector<1x32x256xf32>
    %cst = arith.constant dense<0.000000e+00> : vector<1x32xf32>
    %1 = vector.multi_reduction <add>, %0, %cst [2] : vector<1x32x256xf32> to vector<1x32xf32>
    %2 = vector.shape_cast %1 : vector<1x32xf32> to vector<1x1x32xf32>
    %c0_2 = arith.constant 0 : index
    %c0_3 = arith.constant 0 : index
    %3 = vector.load %arg2[%c0_2, %c0_3] : memref<8x32xf32, #tpu.memory_space<vmem>>, vector<8x32xf32>
    %4 = vector.shape_cast %3 : vector<8x32xf32> to vector<1x8x32xf32>
    %5 = vector.broadcast %2 : vector<1x1x32xf32> to vector<1x8x32xf32>
    %6 = arith.mulf %5, %4 : vector<1x8x32xf32>
    %cst_4 = arith.constant dense<0.000000e+00> : vector<1x8xf32>
    %7 = vector.multi_reduction <add>, %6, %cst_4 [2] : vector<1x8x32xf32> to vector<1x8xf32>
    %c0_5 = arith.constant 0 : index
    %c0_6 = arith.constant 0 : index
    %8 = vector.load %arg3[%c0_5, %c0_6] : memref<1x8xf32, #tpu.memory_space<vmem>>, vector<1x8xf32>
    %9 = arith.addf %7, %8 : vector<1x8xf32>
    %cst_7 = arith.constant 0.000000e+00 : f32
    %10 = vector.broadcast %cst_7 : f32 to vector<1x8xf32>
    %11 = arith.maximumf %9, %10 : vector<1x8xf32>
    %12 = vector.shape_cast %11 : vector<1x8xf32> to vector<1x1x8xf32>
    %c0_8 = arith.constant 0 : index
    %c0_9 = arith.constant 0 : index
    %13 = vector.load %arg4[%c0_8, %c0_9] : memref<32x8xf32, #tpu.memory_space<vmem>>, vector<32x8xf32>
    %14 = vector.shape_cast %13 : vector<32x8xf32> to vector<1x32x8xf32>
    %15 = vector.broadcast %12 : vector<1x1x8xf32> to vector<1x32x8xf32>
    %16 = arith.mulf %15, %14 : vector<1x32x8xf32>
    %cst_10 = arith.constant dense<0.000000e+00> : vector<1x32xf32>
    %17 = vector.multi_reduction <add>, %16, %cst_10 [2] : vector<1x32x8xf32> to vector<1x32xf32>
    %c0_11 = arith.constant 0 : index
    %c0_12 = arith.constant 0 : index
    %18 = vector.load %arg5[%c0_11, %c0_12] : memref<1x32xf32, #tpu.memory_space<vmem>>, vector<1x32xf32>
    %19 = arith.addf %17, %18 : vector<1x32xf32>
    %20 = arith.negf %19 : vector<1x32xf32>
    %21 = math.exp %20 : vector<1x32xf32>
    %cst_13 = arith.constant 1.000000e+00 : f32
    %22 = vector.broadcast %cst_13 : f32 to vector<1x32xf32>
    %23 = arith.addf %22, %21 : vector<1x32xf32>
    %24 = arith.divf %22, %23 : vector<1x32xf32>
    %25 = vector.shape_cast %24 : vector<1x32xf32> to vector<1x32x1xf32>
    %26 = vector.broadcast %25 : vector<1x32x1xf32> to vector<1x32x256xf32>
    %27 = arith.mulf %0, %26 : vector<1x32x256xf32>
    %c0_14 = arith.constant 0 : index
    %c0_15 = arith.constant 0 : index
    %c0_16 = arith.constant 0 : index
    %28 = vector.load %arg6[%c0_14, %c0_15, %c0_16] : memref<1x32x256xf32, #tpu.memory_space<vmem>>, vector<1x32x256xf32>
    tpu.vector_store %arg6[%c0_14, %c0_15, %c0_16], %27 {strides = array<i32>} : memref<1x32x256xf32, #tpu.memory_space<vmem>>, vector<1x32x256xf32>,
    return
  }
  func.func @transform_0(%arg0: i32) -> (i32, i32, i32) {
    %c0_i32 = arith.constant 0 : i32
    %c0_i32_0 = arith.constant 0 : i32
    %c0_i32_1 = arith.constant 0 : i32
    return %arg0, %c0_i32, %c0_i32_0 : i32, i32, i32
  }
  func.func @transform_1(%arg0: i32) -> (i32, i32) {
    %c0_i32 = arith.constant 0 : i32
    %c0_i32_0 = arith.constant 0 : i32
    %c0_i32_1 = arith.constant 0 : i32
    return %c0_i32, %c0_i32_0 : i32, i32
  }
  func.func @transform_2(%arg0: i32) -> (i32, i32) {
    %c0_i32 = arith.constant 0 : i32
    %c0_i32_0 = arith.constant 0 : i32
    %c0_i32_1 = arith.constant 0 : i32
    return %c0_i32, %c0_i32_0 : i32, i32
  }
  func.func @transform_3(%arg0: i32) -> (i32, i32) {
    %c0_i32 = arith.constant 0 : i32
    %c0_i32_0 = arith.constant 0 : i32
    %c0_i32_1 = arith.constant 0 : i32
    return %c0_i32, %c0_i32_0 : i32, i32
  }
  func.func @transform_4(%arg0: i32) -> (i32, i32) {
    %c0_i32 = arith.constant 0 : i32
    %c0_i32_0 = arith.constant 0 : i32
    %c0_i32_1 = arith.constant 0 : i32
    return %c0_i32, %c0_i32_0 : i32, i32
  }
  func.func @transform_5(%arg0: i32) -> (i32, i32, i32) {
    %c0_i32 = arith.constant 0 : i32
    %c0_i32_0 = arith.constant 0 : i32
    %c0_i32_1 = arith.constant 0 : i32
    return %arg0, %c0_i32, %c0_i32_0 : i32, i32, i32
  }
}

</mosaic_0001>

<bundles_post_ra>
// kernel: tpu_custom_call.1
= control target key start
LH: loop header
LB: loop body
LE: loop exit
PB: predicated region body
PF: predicated region fallthrough
CT: control target
= control target key end

     0   :  { %10 = vsyncpa [#allocation3], 0  ;;  %s2277_s0 = inlined_call_operand.hbm [shape: f32[2,32,256], index: 0, kind: input, shape index: {}]   ;;  %s2278_s1 = inlined_call_operand.vmem [shape: f32[8,32], index: 1, kind: input, shape index: {}]   ;;  %s2279_s2 = inlined_call_operand.vmem [shape: f32[1,8], index: 2, kind: input, shape index: {}]   ;;  %s2280_s3 = inlined_call_operand.vmem [shape: f32[32,8], index: 3, kind: input, shape index: {}]   ;;  %s2281_s4 = inlined_call_operand.vmem [shape: f32[1,32], index: 4, kind: input, shape index: {}]   ;;  %s2282_s5 = inlined_call_operand.hbm [shape: f32[2,32,256], index: 5, kind: output, shape index: {}]  }
   0x1   :  { %12 = vsyncpa [#allocation3 + $0x1], 0 }
   0x2   :  { %13 = vsyncpa [#allocation4], 0 }
   0x3   :  { %15 = vsyncpa [#allocation4 + $0x1], 0  ;;  %s1767_s18 = smov 0   ;;  %s1769_s19 = smov 0  }
   0x4   :  { %s1771_s20 = smov 0   ;;  %s1773_s21 = smov 0  }
   0x5 LB: > { %s1788_s22 = sadd.s32 4294967295, %s1730_s21   ;;  %s1491_s23 = sadd.s32 4294967294, %s1730_s21   ;;  %s1730_s21 = sphi %s1773_s21, %s2292_s21   ;;  %s1726_s20 = sphi %s1771_s20, %s2291_s20   ;;  %s1722_s19 = sphi %s1769_s19, %s2290_s19   ;;  %s1718_s18 = sphi %s1767_s18, %s2289_s18  }
   0x6   : > { %s1792_s24 = sadd.s32 1, %s1730_s21   ;;  %s28_s25 = sadd.s32 1, %s1726_s20 }
   0x7   : > { %s25_s26 = ssub.s32 %s1730_s21, %s1792_s24  ;;  %p35_p0 = scmp.ne.s32.totalorder %s1726_s20, %s1722_s19 }
   0x8   : > { %p26_p1 = scmp.eq.s32.totalorder %s25_s26, 0  ;;  %p36_p2 = scmp.eq.s32.totalorder %s1730_s21, 0 }
   0x9   : > { %p41_p3 = scmp.ne.s32.totalorder %s1722_s19, %s1718_s18  ;;  %p42_p4 = scmp.eq.s32.totalorder %s1788_s22, 0 }
   0xa   : > { %s1804_s27 = scalar_select %p26_p1, %s1726_s20, %s28_s25  }
   0xb   : > { %p1806_p5 = por %p36_p2, %p35_p0  ;;  %p1810_p6 = por %p42_p4, %p41_p3 }
   0xc   : > { %p149_p7 = scmp.eq.s32.totalorder %s1788_s22, 1  ;;  %p155_p8 = scmp.eq.s32.totalorder %s1491_s23, 1 }
   0xd   : > { %p1523_p10 = scmp.lt.s32.totalorder %s1730_s21, 2  ;;  %s187_s7 = sand.u32 1, %s1726_s20  }
   0xe   : > { %p1817_p11 = por %p149_p7, %p35_p0  ;;  %p1821_p12 = por %p155_p8, %p41_p3 }
   0xf   : > { %s1509_s8 = sshll.u32 %s1730_s21, 6  ;;  %s1494_s9 = sshll.u32 %s187_s7, 6 }
  0x10   : > { %s196_s12 = scalar_lea.hbm %s2277_s0, %s1509_s8  ;;  %s191_s14 = scalar_lea.vmem [#allocation2], %s1494_s9 }
  0x11   : > { %s197_s13 = sshll.u32 %s196_s12, 4  ;;  %s199_s15 = sshll.u32 %s191_s14, 4  ;;  %s198_s13 = int_to_ptr.hbm [resolvable:$true] %s197_s13  ;;  %s200_s15 = int_to_ptr.vmem [resolvable:$true] %s199_s15 }
  0x12   : > { %p1832_p13 = pnand %p1523_p10, %p1806_p5  ;;  %p1497_p0 = scmp.ge.s32.totalorder %s1730_s21, 1 }
  0x13   : > { %p207_p1 = scmp.lt.s32.totalorder %s1730_s21, 3  ;;  %s188_s17 = scalar_lea.sflag [#allocation3], %s187_s7 }
  0x14   : > { %s1634_s23 = sshra.s32 %s198_s13, 4  ;;  %p1638_p3 = pneg %p1832_p13  ;;  %s1635_s23 = int_to_ptr.hbm [resolvable:$true] %s1634_s23 }
  0x15   : > { %s1636_s25 = scalar_lea.hbm %s1635_s23, 64  ;;  %s1641_s28 = scalar_lea.hbm %s2277_s0, 128 }
  0x16   : > { %p1637_p2 = scmp.ne.s32.totalorder %s1635_s23, %s1636_s25  ;;  %p1642_p5 = scmp.lt.s32.totalorder %s1635_s23, %s2277_s0 }
  0x17   : > { %p1643_p8 = scmp.lt.s32.totalorder %s1641_s28, %s1636_s25 }
  0x18   : > { %p1639_p4 = pnand %p1638_p3, %p1637_p2 }
  0x19   : > { %p1644_p10 = por %p1643_p8, %p1642_p5 }
  0x1a   : > { %p1640_p7 = pneg %p1639_p4 }
  0x1c   : > { %p1645_p9 = pnand %p1644_p10, %p1640_p7 }
  0x1e   : > { %1648 = shalt.err (!%p1645_p9)
}
  0x1f   : > { %s1732_s7 = smov 256   ;;  %s1733_s11 = smov 16  }
  0x20   : > { %1518 = dma.hbm_to_vmem [thread:$0]  (!%p1832_p13), %s198_s13, 1024, %s200_s15, %s188_s17, %s1732_s7, %s1732_s7, %s1733_s11  }
  0x21   : > { %p208_p2 = pnand %p1497_p0, %p207_p1 }
  0x22   : > { %s1853_s12 = sand.u32 (!%p208_p2), 1, %s1722_s19  }
  0x23   : > { %211 = sbr.rel (%p208_p2) target bundleno = 1101 (0x44d), region = 40  ;;  %s1498_s14 = sshll.u32 (!%p208_p2), %s1853_s12, 6 }
  0x24   : > { %s214_s23 = scalar_lea.sflag (!%p208_p2), [#allocation3], %s1853_s12  ;;  %s1859_s25 = scalar_lea.vmem (!%p208_p2), [#allocation2], %s1498_s14 }
  0x28   : > { %1709 = dma.done.wait (%p1810_p6), %s214_s23, 1024  }
  0x29   : > { %1711 = vsyncadd (%p1810_p6), %s214_s23, 4294966272  ;;  %v268_v0 = vlaneseq  ;;  %v249_v3 = vld [vmem:[%s1859_s25 + $0x20] sm:$0xff]  ;;  %v250_v4 = vld [vmem:[%s1859_s25 + $0x28] sm:$0xff]  ;;  %v1734_v26 = vmov 0   ;;  %vm664_vm0 = vcmask 130112   ;;  %vm668_vm1 = vcmask 195712  }
  0x2a   : > { %v245_v5 = vld [vmem:[%s1859_s25] sm:$0xff]  ;;  %v259_v6 = vadd.f32 %v250_v4, %v249_v3  ;;  %v246_v7 = vld [vmem:[%s1859_s25 + $0x8] sm:$0xff]  ;;  %v251_v11 = vld [vmem:[%s1859_s25 + $0x30] sm:$0xff]  ;;  %vm672_vm2 = vcmask 261312   ;;  %vm723_vm3 = vcmask 1041409   ;;  %vm725_vm4 = vcmask 1042434  }
  0x2b   : > { %v1866_v1 = vshrl.u32 %v268_v0, 7  ;;  %v265_v8 = vld [vmem:[%s2278_s1] sm:$0xff]  ;;  %v253_v9 = vadd.f32 %v246_v7, %v245_v5  ;;  %v252_v12 = vld [vmem:[%s1859_s25 + $0x38] sm:$0xff]  ;;  %v247_v13 = vld [vmem:[%s1859_s25 + $0x10] sm:$0xff]  ;;  %vm727_vm5 = vcmask 1043459   ;;  %vm729_vm6 = vcmask 1044484  }
  0x2c   : > { %v267_v10 = vperm.slane %v265_v8, 0  ;;  %260 = vadd.xlane.f32.xlu1 %v259_v6  ;;  %v248_v14 = vld [vmem:[%s1859_s25 + $0x18] sm:$0xff]  ;;  %v262_v15 = vadd.f32 %v252_v12, %v251_v11  ;;  %v367_v18 = vperm.slane %v265_v8, 4  ;;  %v292_v19 = vperm.slane %v265_v8, 1  ;;  %s244_s13 = scalar_lea.vmem [#allocation5], %s1498_s14  ;;  %s1510_s15 = sshll.u32 %s1788_s22, 6 }
  0x2d   : > { %1562 = vset.pattern.permute.xlu2 %v1866_v1  ;;  %1576 = vset.pattern.permute.xlu0 %v1866_v1  ;;  %v1871_v2 = vadd.s32 24, %v1866_v1  ;;  %v256_v16 = vadd.f32 %v248_v14, %v247_v13  ;;  %v1886_v17 = vadd.s32 8, %v1866_v1  ;;  %v392_v20 = vperm.slane %v265_v8, 5  ;;  %s1414_s17 = scalar_lea.hbm %s2282_s5, %s1510_s15  ;;  %s1415_s26 = sshll.u32 %s244_s13, 4  ;;  %s1416_s26 = int_to_ptr.vmem [resolvable:$true] %s1415_s26 }
  0x2e   : > { %254 = vadd.xlane.f32.xlu0 %v253_v9  ;;  %v317_v21 = vperm.slane %v265_v8, 2  ;;  %v1894_v22 = vadd.s32 16, %v1866_v1  ;;  %v1899_v23 = vperm.slane %v265_v8, 6  ;;  %v342_v24 = vperm.slane %v265_v8, 3  ;;  %s1417_s8 = sshll.u32 %s1414_s17, 4  ;;  %s1403_s28 = scalar_lea.sflag [#allocation4], %s1853_s12  ;;  %s1418_s8 = int_to_ptr.hbm [resolvable:$true] %s1417_s8 }
  0x2f   : > { %1564 = vset.pattern.permute.xlu1 %v1871_v2  ;;  %v1906_v25 = vperm.slane %v265_v8, 7  ;;  %vm731_vm7 = vcmask 1045509   ;;  %vm733_vm8 = vcmask 1046534   ;;  %vm735_vm9 = vcmask 1047559   ;;  %s1678_s22 = sshra.s32 %s1418_s8, 4  ;;  %s1684_s11 = scalar_lea.hbm %s2282_s5, 128  ;;  %s1679_s22 = int_to_ptr.hbm [resolvable:$true] %s1678_s22 }
  0x30   : > { %vm738_vm10 = vcmask 261120   ;;  %vm1242_vm11 = vcmask 64512   ;;  %s1680_s9 = scalar_lea.hbm %s1679_s22, 64  ;;  %p1685_p0 = scmp.lt.s32.totalorder %s1679_s22, %s2282_s5 }
  0x31   : > { %p1681_p6 = scmp.ne.s32.totalorder %s1679_s22, %s1680_s9  ;;  %p1686_p1 = scmp.lt.s32.totalorder %s1684_s11, %s1680_s9 }
  0x33   : > { %p1682_p9 = pnand %p1681_p6, %p1817_p11  ;;  %p1687_p3 = por %p1686_p1, %p1685_p0 }
  0x34   : > { %263 = vadd.xlane.f32.xlu1 %v262_v15 }
  0x35   : > { %272 = vperm.xlu2 %1562, %v267_v10   ;;  %p1683_p13 = pneg %p1682_p9 }
  0x36   : > { %257 = vadd.xlane.f32.xlu0 %v256_v16 }
  0x37   : > { %p1688_p4 = pnand %p1687_p3, %p1683_p13 }
  0x3d   : > { %1563 = vset.pattern.permute.xlu2 %v1886_v17 }
  0x45   : > { %278 = vperm.xlu2 %1563, %v267_v10  }
  0x4a   : > { %372 = vperm.xlu0 %1576, %v367_v18  }
  0x4d   : > { %1565 = vset.pattern.permute.xlu2 %v1866_v1  ;;  %290 = vperm.xlu1 %1564, %v267_v10  }
  0x52   : > { %1581 = vset.pattern.permute.xlu0 %v1886_v17 }
  0x55   : > { %297 = vperm.xlu2 %1565, %v292_v19   ;;  %1569 = vset.pattern.permute.xlu1 %v1866_v1 }
  0x5a   : > { %403 = vperm.xlu0 %1581, %v392_v20  }
  0x5d   : > { %1566 = vset.pattern.permute.xlu2 %v1886_v17  ;;  %322 = vperm.xlu1 %1569, %v317_v21  }
  0x62   : > { %1582 = vset.pattern.permute.xlu0 %v1894_v22 }
  0x65   : > { %303 = vperm.xlu2 %1566, %v292_v19   ;;  %1571 = vset.pattern.permute.xlu1 %v1894_v22 }
  0x6a   : > { %284 = vperm.xlu0 %1582, %v267_v10  }
  0x6d   : > { %1567 = vset.pattern.permute.xlu2 %v1894_v22  ;;  %334 = vperm.xlu1 %1571, %v317_v21  }
  0x72   : > { %434 = vperm.xlu0 %1582, %v1899_v23  }
  0x75   : > { %309 = vperm.xlu2 %1567, %v292_v19   ;;  %1573 = vset.pattern.permute.xlu1 %v1886_v17 }
  0x7a   : > { %1587 = vset.pattern.permute.xlu0 %v1871_v2 }
  0x7d   : > { %1568 = vset.pattern.permute.xlu2 %v1871_v2  ;;  %353 = vperm.xlu1 %1573, %v342_v24  }
  0x82   : > { %340 = vperm.xlu0 %1587, %v317_v21  }
  0x85   : > { %315 = vperm.xlu2 %1568, %v292_v19   ;;  %1575 = vset.pattern.permute.xlu1 %v1871_v2 }
  0x8a   : > { %465 = vperm.xlu0 %1587, %v1906_v25  }
  0x8d   : > { %1570 = vset.pattern.permute.xlu2 %v1886_v17  ;;  %365 = vperm.xlu1 %1575, %v342_v24  }
  0x8f   : > { %v1913_v27 = vpop.permute.xlu2 %272 }
  0x92   : > { %1593 = vset.pattern.permute.xlu0 %v1734_v26 }
  0x95   : > { %328 = vperm.xlu2 %1570, %v317_v21   ;;  %1578 = vset.pattern.permute.xlu1 %v1894_v22 }
  0x9d   : > { %1572 = vset.pattern.permute.xlu2 %v1866_v1  ;;  %384 = vperm.xlu1 %1578, %v367_v18  }
  0x9f   : > { %v279_v28 = vpop.permute.xlu2 %278  ;;  %v1924_v32 = vpop.xlane.xlu1 %260 }
  0xa1   : > { %v1917_v29 = vpop.xlane.xlu0 %254 }
  0xa2   : > { %v499_v60 = vmul.f32 %v1913_v27, %v1917_v29 }
  0xa5   : > { %347 = vperm.xlu2 %1572, %v342_v24   ;;  %1580 = vset.pattern.permute.xlu1 %v1866_v1 }
  0xa7   : > { %v1927_v34 = vpop.xlane.xlu1 %263 }
  0xa9   : > { %v1932_v38 = vpop.xlane.xlu0 %257 }
  0xaa   : > { %v500_v44 = vmul.f32 %v279_v28, %v1932_v38 }
  0xad   : > { %1574 = vset.pattern.permute.xlu2 %v1894_v22  ;;  %397 = vperm.xlu1 %1580, %v392_v20  }
  0xaf   : > { %v298_v30 = vpop.permute.xlu2 %297 }
  0xb0   : > { %v503_v31 = vmul.f32 %v298_v30, %v1917_v29 }
  0xb2   : > { %576 = vperm.xlu0 %1593, %v503_v31  }
  0xb5   : > { %359 = vperm.xlu2 %1574, %v342_v24   ;;  %1584 = vset.pattern.permute.xlu1 %v1871_v2 }
  0xbc   : > { %v1937_v42 = vpop.permute.xlu0 %372 }
  0xbd   : > { %1577 = vset.pattern.permute.xlu2 %v1886_v17  ;;  %415 = vperm.xlu1 %1584, %v392_v20  }
  0xbf   : > { %v304_v33 = vpop.permute.xlu2 %303  ;;  %v291_v36 = vpop.permute.xlu1 %290 }
  0xc0   : > { %v502_v49 = vmul.f32 %v291_v36, %v1927_v34  ;;  %v504_v6 = vmul.f32 %v304_v33, %v1932_v38 }
  0xc5   : > { %378 = vperm.xlu2 %1577, %v367_v18   ;;  %1586 = vset.pattern.permute.xlu1 %v1886_v17 }
  0xcc   : > { %v404_v45 = vpop.permute.xlu0 %403 }
  0xcd   : > { %1579 = vset.pattern.permute.xlu2 %v1871_v2  ;;  %428 = vperm.xlu1 %1586, %v1899_v23   ;;  %v520_v61 = vmul.f32 %v404_v45, %v1932_v38 }
  0xcf   : > { %v310_v35 = vpop.permute.xlu2 %309  ;;  %v323_v39 = vpop.permute.xlu1 %322 }
  0xd0   : > { %v505_v53 = vmul.f32 %v310_v35, %v1924_v32  ;;  %v507_v55 = vmul.f32 %v323_v39, %v1917_v29 }
  0xd5   : > { %390 = vperm.xlu2 %1579, %v367_v18   ;;  %1589 = vset.pattern.permute.xlu1 %v1866_v1  ;;  %v515_v18 = vmul.f32 %v1937_v42, %v1917_v29 }
  0xdc   : > { %v285_v50 = vpop.permute.xlu0 %284 }
  0xdd   : > { %1583 = vset.pattern.permute.xlu2 %v1894_v22  ;;  %447 = vperm.xlu1 %1589, %v1906_v25   ;;  %v501_v3 = vmul.f32 %v285_v50, %v1924_v32 }
  0xdf   : > { %v316_v37 = vpop.permute.xlu2 %315  ;;  %v335_v43 = vpop.permute.xlu1 %334 }
  0xe0   : > { %v506_v9 = vmul.f32 %v316_v37, %v1927_v34  ;;  %v509_v12 = vmul.f32 %v335_v43, %v1924_v32 }
  0xe4   : > { %v435_v54 = vpop.permute.xlu0 %434 }
  0xe5   : > { %409 = vperm.xlu2 %1583, %v392_v20   ;;  %1591 = vset.pattern.permute.xlu1 %v1894_v22  ;;  %v525_v14 = vmul.f32 %v435_v54, %v1924_v32 }
  0xed   : > { %1585 = vset.pattern.permute.xlu2 %v1866_v1  ;;  %459 = vperm.xlu1 %1591, %v1906_v25  }
  0xef   : > { %v329_v40 = vpop.permute.xlu2 %328  ;;  %v354_v46 = vpop.permute.xlu1 %353 }
  0xf0   : > { %v508_v41 = vmul.f32 %v329_v40, %v1932_v38  ;;  %v512_v15 = vmul.f32 %v354_v46, %v1932_v38 }
  0xf2   : > { %591 = vperm.xlu0 %1593, %v508_v41   ;;  %v1981_v41 = vand.u32 127, %v268_v0 }
  0xf4   : > { %v341_v58 = vpop.permute.xlu0 %340  ;;  %v1997_v45 = vadd.s32 4294967280, %v1981_v41  ;;  %v2000_v46 = vadd.s32 4294967272, %v1981_v41 }
  0xf5   : > { %422 = vperm.xlu2 %1585, %v1899_v23   ;;  %1594 = vset.pattern.permute.xlu1 %v1734_v26  ;;  %v510_v59 = vmul.f32 %v341_v58, %v1927_v34 }
  0xf6   : > { %567 = vperm.xlu1 %1594, %v500_v44  }
  0xfc   : > { %v466_v39 = vpop.permute.xlu0 %465 }
  0xfd   : > { %1588 = vset.pattern.permute.xlu2 %v1871_v2  ;;  %v530_v40 = vmul.f32 %v466_v39, %v1927_v34 }
  0xfe   : > { %573 = vperm.xlu1 %1594, %v502_v49  }
  0xff   : > { %v348_v47 = vpop.permute.xlu2 %347  ;;  %v366_v51 = vpop.permute.xlu1 %365 }
 0x100   : > { %v511_v48 = vmul.f32 %v348_v47, %v1917_v29  ;;  %v514_v52 = vmul.f32 %v366_v51, %v1927_v34 }
 0x102   : > { %600 = vperm.xlu0 %1593, %v511_v48  }
 0x105   : > { %440 = vperm.xlu2 %1588, %v1899_v23  }
 0x106   : > { %582 = vperm.xlu1 %1594, %v505_v53  }
 0x10a   : > { %609 = vperm.xlu0 %1593, %v514_v52  }
 0x10d   : > { %1590 = vset.pattern.permute.xlu2 %v1886_v17 }
 0x10e   : > { %588 = vperm.xlu1 %1594, %v507_v55  }
 0x10f   : > { %v385_v56 = vpop.permute.xlu1 %384  ;;  %v360_v62 = vpop.permute.xlu2 %359 }
 0x110   : > { %v517_v57 = vmul.f32 %v385_v56, %v1924_v32  ;;  %v513_v63 = vmul.f32 %v360_v62, %v1924_v32 }
 0x112   : > { %618 = vperm.xlu0 %1593, %v517_v57  }
 0x115   : > { %453 = vperm.xlu2 %1590, %v1906_v25  }
 0x116   : > { %597 = vperm.xlu1 %1594, %v510_v59  }
 0x11a   : > { %627 = vperm.xlu0 %1593, %v520_v61  }
 0x11d   : > { %1592 = vset.pattern.permute.xlu2 %v1734_v26 }
 0x11e   : > { %564 = vperm.xlu2 %1592, %v499_v60   ;;  %606 = vperm.xlu1 %1594, %v513_v63  }
 0x11f   : > { %v379_v4 = vpop.permute.xlu2 %378  ;;  %v398_v7 = vpop.permute.xlu1 %397 }
 0x120   : > { %v516_v5 = vmul.f32 %v379_v4, %v1932_v38  ;;  %v519_v8 = vmul.f32 %v398_v7, %v1917_v29 }
 0x124   : > { %v577_v57 = vpop.permute.xlu0 %576 }
 0x125   : > { %v674_v60 = vperm.slane %v577_v57, %v1981_v41 }
 0x126   : > { %570 = vperm.xlu2 %1592, %v501_v3   ;;  %615 = vperm.xlu1 %1594, %v516_v5  }
 0x12e   : > { %579 = vperm.xlu2 %1592, %v504_v6   ;;  %624 = vperm.xlu1 %1594, %v519_v8  }
 0x12f   : > { %v416_v10 = vpop.permute.xlu1 %415  ;;  %v391_v13 = vpop.permute.xlu2 %390 }
 0x130   : > { %v522_v11 = vmul.f32 %v416_v10, %v1927_v34  ;;  %v518_v21 = vmul.f32 %v391_v13, %v1927_v34 }
 0x136   : > { %585 = vperm.xlu2 %1592, %v506_v9   ;;  %633 = vperm.xlu1 %1594, %v522_v11   ;;  %v2017_v9 = vld [vmem:[%s2280_s3 + $0x8] sm:$0xff] }
 0x137   : > { %v825_v11 = vperm.slane %v2017_v9, 1 }
 0x13e   : > { %594 = vperm.xlu2 %1592, %v509_v12   ;;  %642 = vperm.xlu1 %1594, %v525_v14   ;;  %v839_v14 = vperm.slane %v2017_v9, 3 }
 0x13f   : > { %v410_v16 = vpop.permute.xlu2 %409  ;;  %v429_v23 = vpop.permute.xlu1 %428 }
 0x140   : > { %v521_v24 = vmul.f32 %v410_v16, %v1924_v32  ;;  %v524_v30 = vmul.f32 %v429_v23, %v1932_v38  ;;  %v832_v23 = vperm.slane %v2017_v9, 2 }
 0x146   : > { %603 = vperm.xlu2 %1592, %v512_v15  }
 0x14e   : > { %612 = vperm.xlu2 %1592, %v515_v18  }
 0x14f   : > { %v423_v19 = vpop.permute.xlu2 %422  ;;  %v448_v25 = vpop.permute.xlu1 %447 }
 0x150   : > { %v523_v20 = vmul.f32 %v423_v19, %v1917_v29  ;;  %v527_v35 = vmul.f32 %v448_v25, %v1917_v29  ;;  %v1987_v29 = vadd.s32 4294967288, %v1981_v41  ;;  %v853_v19 = vperm.slane %v2017_v9, 5 }
 0x152   : > { %636 = vperm.xlu0 %1593, %v523_v20  }
 0x156   : > { %621 = vperm.xlu2 %1592, %v518_v21  }
 0x15e   : > { %630 = vperm.xlu2 %1592, %v521_v24   ;;  %v2033_v24 = vld [vmem:[%s2280_s3 + $0x10] sm:$0xff] }
 0x15f   : > { %v441_v27 = vpop.permute.xlu2 %440  ;;  %v460_v31 = vpop.permute.xlu1 %459 }
 0x160   : > { %v526_v28 = vmul.f32 %v441_v27, %v1927_v34  ;;  %v529_v33 = vmul.f32 %v460_v31, %v1924_v32  ;;  %v1608_v32 = vld [vmem:[%s2279_s2] ss:$0 sm:$0xff]  ;;  %v874_v27 = vperm.slane %v2033_v24, 0 }
 0x161   : > { %v754_v34 = vld [vmem:[%s2280_s3] sm:$0xff] }
 0x162   : > { %645 = vperm.xlu0 %1593, %v526_v28   ;;  %v776_v47 = vperm.slane %v754_v34, 2  ;;  %v762_v52 = vperm.slane %v754_v34, 0  ;;  %v790_v55 = vperm.slane %v754_v34, 4  ;;  %v769_v58 = vperm.slane %v754_v34, 1 }
 0x163   : > { %v804_v62 = vperm.slane %v754_v34, 6  ;;  %v783_v7 = vperm.slane %v754_v34, 3  ;;  %v797_v12 = vperm.slane %v754_v34, 5  ;;  %v811_v16 = vperm.slane %v754_v34, 7 }
 0x164   : > { %v592_v18 = vpop.permute.xlu0 %591 }
 0x166   : > { %639 = vperm.xlu2 %1592, %v524_v30   ;;  %v846_v30 = vperm.slane %v2017_v9, 4 }
 0x168   : > { %v568_v42 = vpop.permute.xlu1 %567 }
 0x169   : > { %v663_v43 = vperm.slane %v568_v42, %v1987_v29 }
 0x16a   : > { %654 = vperm.xlu0 %1593, %v529_v33   ;;  %v895_v33 = vperm.slane %v2033_v24, 3 }
 0x16e   : > { %648 = vperm.xlu2 %1592, %v527_v35  }
 0x16f   : > { %v454_v36 = vpop.permute.xlu2 %453 }
 0x170   : > { %v528_v37 = vmul.f32 %v454_v36, %v1932_v38  ;;  %v574_v48 = vpop.permute.xlu1 %573  ;;  %v860_v36 = vperm.slane %v2017_v9, 6 }
 0x171   : > { %v671_v51 = vperm.slane %v574_v48, %v2000_v46 }
 0x172   : > { %651 = vperm.xlu1 %1594, %v528_v37   ;;  %1595 = vset.pattern.permute.xlu0 %v1866_v1 }
 0x174   : > { %v601_v25 = vpop.permute.xlu0 %600 }
 0x176   : > { %657 = vperm.xlu2 %1592, %v530_v40   ;;  %v916_v40 = vperm.slane %v2033_v24, 6 }
 0x178   : > { %v565_v38 = vpop.permute.xlu2 %564  ;;  %v583_v61 = vpop.permute.xlu1 %582 }
 0x179   : > { %v661_v44 = vperm.slane %v565_v38, %v1981_v41  ;;  %v677_v3 = vperm.slane %v583_v61, %v1997_v45  ;;  %v2048_v38 = vld [vmem:[%s2280_s3 + $0x18] sm:$0xff]  ;;  %v688_v61 = vperm.slane %v601_v25, %v1981_v41 }
 0x17a   : > { %749 = vperm.xlu0 %1595, %v1608_v32   ;;  %1597 = vset.pattern.permute.xlu1 %v1866_v1  ;;  %v881_v32 = vperm.slane %v2033_v24, 1  ;;  %v958_v48 = vperm.slane %v2048_v38, 4 }
 0x17b   : > { %v665_v0 = vsel %vm664_vm0, %v663_v43, %v661_v44  ;;  %v937_v44 = vperm.slane %v2048_v38, 1 }
 0x17c   : > { %v2038_v35 = vpop.permute.xlu0 %609 }
 0x17e   : > { %1596 = vset.pattern.permute.xlu2 %v1866_v1 }
 0x180   : > { %v571_v49 = vpop.permute.xlu2 %570  ;;  %v589_v15 = vpop.permute.xlu1 %588 }
 0x181   : > { %v667_v50 = vperm.slane %v571_v49, %v1997_v45 }
 0x182   : > { %781 = vperm.xlu0 %1595, %v776_v47   ;;  %v902_v47 = vperm.slane %v2033_v24, 4 }
 0x183   : > { %v669_v53 = vsel %vm668_vm1, %v667_v50, %v665_v0 }
 0x184   : > { %v673_v54 = vsel %vm672_vm2, %v671_v51, %v669_v53  ;;  %v619_v42 = vpop.permute.xlu0 %618  ;;  %v979_v53 = vperm.slane %v2048_v38, 7 }
 0x186   : > { %767 = vperm.xlu2 %1596, %v762_v52   ;;  %v923_v52 = vperm.slane %v2033_v24, 7 }
 0x188   : > { %v580_v56 = vpop.permute.xlu2 %579  ;;  %v2027_v21 = vpop.permute.xlu1 %597 }
 0x189   : > { %v675_v59 = vperm.slane %v580_v56, %v1987_v29 }
 0x18a   : > { %795 = vperm.xlu0 %1595, %v790_v55  }
 0x18b   : > { %v676_v63 = vsel %vm664_vm0, %v675_v59, %v674_v60  ;;  %v944_v59 = vperm.slane %v2048_v38, 2  ;;  %v682_v60 = vperm.slane %v592_v18, %v1987_v29 }
 0x18c   : > { %v678_v6 = vsel %vm668_vm1, %v677_v3, %v676_v63  ;;  %v628_v34 = vpop.permute.xlu0 %627 }
 0x18e   : > { %774 = vperm.xlu2 %1596, %v769_v58  }
 0x190   : > { %v586_v4 = vpop.permute.xlu2 %585  ;;  %v607_v31 = vpop.permute.xlu1 %606 }
 0x191   : > { %v679_v5 = vperm.slane %v586_v4, %v2000_v46  ;;  %v691_v4 = vperm.slane %v607_v31, %v1997_v45  ;;  %v965_v31 = vperm.slane %v2048_v38, 5 }
 0x192   : > { %809 = vperm.xlu0 %1595, %v804_v62  }
 0x193   : > { %v680_v8 = vsel %vm672_vm2, %v679_v5, %v678_v6 }
 0x194   : > { %v2020_v10 = vsel %vm723_vm3, %v680_v8, %v673_v54  ;;  %v681_v54 = vperm.slane %v589_v15, %v1981_v41  ;;  %v703_v15 = vperm.slane %v628_v34, %v1987_v29 }
 0x196   : > { %788 = vperm.xlu2 %1596, %v783_v7   ;;  %v683_v3 = vsel %vm664_vm0, %v682_v60, %v681_v54  ;;  %v930_v60 = vperm.slane %v2048_v38, 0 }
 0x198   : > { %v2023_v13 = vpop.permute.xlu2 %594  ;;  %v616_v39 = vpop.permute.xlu1 %615 }
 0x199   : > { %v684_v57 = vperm.slane %v2023_v13, %v1997_v45  ;;  %v696_v8 = vperm.slane %v616_v39, %v1987_v29  ;;  %v693_v13 = vperm.slane %v2038_v35, %v2000_v46 }
 0x19a   : > { %830 = vperm.xlu0 %1595, %v825_v11  }
 0x19b   : > { %v685_v7 = vsel %vm668_vm1, %v684_v57, %v683_v3  ;;  %v867_v57 = vperm.slane %v2017_v9, 7 }
 0x19e   : > { %802 = vperm.xlu2 %1596, %v797_v12  }
 0x1a0   : > { %v604_v20 = vpop.permute.xlu2 %603  ;;  %v625_v0 = vpop.permute.xlu1 %624 }
 0x1a1   : > { %v689_v55 = vperm.slane %v604_v20, %v1987_v29  ;;  %v702_v6 = vperm.slane %v625_v0, %v1981_v41 }
 0x1a2   : > { %844 = vperm.xlu0 %1595, %v839_v14   ;;  %v686_v14 = vperm.slane %v2027_v21, %v2000_v46 }
 0x1a3   : > { %v690_v5 = vsel %vm664_vm0, %v689_v55, %v688_v61  ;;  %v951_v61 = vperm.slane %v2048_v38, 3 }
 0x1a4   : > { %v687_v25 = vsel %vm672_vm2, %v686_v14, %v685_v7 }
 0x1a6   : > { %816 = vperm.xlu2 %1596, %v811_v16   ;;  %v692_v16 = vsel %vm668_vm1, %v691_v4, %v690_v5 }
 0x1a8   : > { %v613_v28 = vpop.permute.xlu2 %612  ;;  %v634_v51 = vpop.permute.xlu1 %633 }
 0x1a9   : > { %v695_v62 = vperm.slane %v613_v28, %v1981_v41  ;;  %v707_v35 = vperm.slane %v634_v51, %v2000_v46 }
 0x1aa   : > { %858 = vperm.xlu0 %1595, %v853_v19  }
 0x1ab   : > { %v697_v18 = vsel %vm664_vm0, %v696_v8, %v695_v62 }
 0x1ae   : > { %837 = vperm.xlu2 %1596, %v832_v23   ;;  %v698_v23 = vperm.slane %v619_v42, %v1997_v45 }
 0x1b0   : > { %v2041_v37 = vpop.permute.xlu2 %621  ;;  %v643_v63 = vpop.permute.xlu1 %642 }
 0x1b1   : > { %v700_v19 = vperm.slane %v2041_v37, %v2000_v46  ;;  %v712_v37 = vperm.slane %v643_v63, %v1997_v45  ;;  %v972_v63 = vperm.slane %v2048_v38, 6 }
 0x1b2   : > { %879 = vperm.xlu0 %1595, %v874_v27   ;;  %v704_v27 = vsel %vm664_vm0, %v703_v15, %v702_v6 }
 0x1b6   : > { %851 = vperm.xlu2 %1596, %v846_v30  }
 0x1b8   : > { %v631_v43 = vpop.permute.xlu2 %630 }
 0x1b9   : > { %v705_v11 = vperm.slane %v631_v43, %v1997_v45 }
 0x1ba   : > { %900 = vperm.xlu0 %1595, %v895_v33   ;;  %v694_v33 = vsel %vm672_vm2, %v693_v13, %v692_v16 }
 0x1bb   : > { %v706_v21 = vsel %vm668_vm1, %v705_v11, %v704_v27 }
 0x1be   : > { %865 = vperm.xlu2 %1596, %v860_v36   ;;  %v699_v36 = vsel %vm668_vm1, %v698_v23, %v697_v18 }
 0x1bf   : > { %v701_v42 = vsel %vm672_vm2, %v700_v19, %v699_v36 }
 0x1c0   : > { %v640_v49 = vpop.permute.xlu2 %639 }
 0x1c1   : > { %v710_v20 = vperm.slane %v640_v49, %v1987_v29 }
 0x1c2   : > { %921 = vperm.xlu0 %1595, %v916_v40   ;;  %v726_v40 = vsel %vm725_vm4, %v687_v25, %v2020_v10 }
 0x1c4   : > { %v637_v50 = vpop.permute.xlu0 %636 }
 0x1c5   : > { %v709_v12 = vperm.slane %v637_v50, %v1981_v41 }
 0x1c6   : > { %886 = vperm.xlu2 %1596, %v881_v32  }
 0x1c7   : > { %v711_v28 = vsel %vm664_vm0, %v710_v20, %v709_v12 }
 0x1c8   : > { %v649_v58 = vpop.permute.xlu2 %648  ;;  %v713_v34 = vsel %vm668_vm1, %v712_v37, %v711_v28 }
 0x1c9   : > { %v716_v0 = vperm.slane %v649_v58, %v1981_v41  ;;  %v888_v58 = vperm.slane %v2033_v24, 2 }
 0x1ca   : > { %942 = vperm.xlu0 %1595, %v937_v44   ;;  %v708_v44 = vsel %vm672_vm2, %v707_v35, %v706_v21 }
 0x1ce   : > { %907 = vperm.xlu2 %1596, %v902_v47  }
 0x1d0   : > { %v658_v32 = vpop.permute.xlu2 %657 }
 0x1d1   : > { %v721_v51 = vperm.slane %v658_v32, %v2000_v46 }
 0x1d2   : > { %963 = vperm.xlu0 %1595, %v958_v48   ;;  %v728_v48 = vsel %vm727_vm5, %v694_v33, %v726_v40 }
 0x1d3   : > { %v730_v50 = vsel %vm729_vm6, %v701_v42, %v728_v48 }
 0x1d4   : > { %v646_v56 = vpop.permute.xlu0 %645  ;;  %v732_v54 = vsel %vm731_vm7, %v708_v44, %v730_v50 }
 0x1d5   : > { %v714_v30 = vperm.slane %v646_v56, %v2000_v46  ;;  %v818_v46 = vperm.slane %v2017_v9, 0 }
 0x1d6   : > { %928 = vperm.xlu2 %1596, %v923_v52  }
 0x1d7   : > { %v715_v49 = vsel %vm672_vm2, %v714_v30, %v713_v34 }
 0x1d8   : > { %v734_v55 = vsel %vm733_vm8, %v715_v49, %v732_v54 }
 0x1da   : > { %984 = vperm.xlu0 %1595, %v979_v53  }
 0x1dc   : > { %v655_v39 = vpop.permute.xlu0 %654 }
 0x1dd   : > { %v719_v10 = vperm.slane %v655_v39, %v1997_v45 }
 0x1de   : > { %949 = vperm.xlu2 %1596, %v944_v59   ;;  %v909_v59 = vperm.slane %v2033_v24, 5 }
 0x1e0   : > { %v768_v62 = vpop.permute.xlu2 %767 }
 0x1e2   : > { %1600 = vset.pattern.permute.xlu0 %v1734_v26 }
 0x1e4   : > { %v652_v43 = vpop.permute.xlu1 %651 }
 0x1e5   : > { %v717_v47 = vperm.slane %v652_v43, %v1987_v29 }
 0x1e6   : > { %970 = vperm.xlu2 %1596, %v965_v31  }
 0x1e7   : > { %v718_v52 = vsel %vm664_vm0, %v717_v47, %v716_v0 }
 0x1e8   : > { %v720_v53 = vsel %vm668_vm1, %v719_v10, %v718_v52  ;;  %v775_v3 = vpop.permute.xlu2 %774 }
 0x1e9   : > { %v722_v29 = vsel %vm672_vm2, %v721_v51, %v720_v53 }
 0x1ea   : > { %v736_v45 = vsel %vm735_vm9, %v722_v29, %v734_v55 }
 0x1eb   : > { %v739_v56 = vsel %vm738_vm10, %v736_v45, 0.0 }
 0x1ec   : > { %740 = vadd.xlane.f32.xlu1 %v739_v56  ;;  %v750_v4 = vpop.permute.xlu0 %749 }
 0x1ee   : > { %1598 = vset.pattern.permute.xlu2 %v1734_v26 }
 0x1f0   : > { %v789_v9 = vpop.permute.xlu2 %788 }
 0x1f4   : > { %v782_v5 = vpop.permute.xlu0 %781 }
 0x1f8   : > { %v803_v6 = vpop.permute.xlu2 %802 }
 0x1fc   : > { %v796_v7 = vpop.permute.xlu0 %795 }
 0x200   : > { %v817_v24 = vpop.permute.xlu2 %816 }
 0x204   : > { %v810_v8 = vpop.permute.xlu0 %809 }
 0x205   : > { %823 = vperm.xlu1 %1597, %v818_v46  }
 0x208   : > { %v838_v11 = vpop.permute.xlu2 %837 }
 0x20c   : > { %v831_v13 = vpop.permute.xlu0 %830 }
 0x20d   : > { %872 = vperm.xlu1 %1597, %v867_v57  }
 0x210   : > { %v852_v19 = vpop.permute.xlu2 %851 }
 0x214   : > { %v845_v20 = vpop.permute.xlu0 %844 }
 0x215   : > { %893 = vperm.xlu1 %1597, %v888_v58  }
 0x218   : > { %v866_v21 = vpop.permute.xlu2 %865 }
 0x21c   : > { %v859_v28 = vpop.permute.xlu0 %858 }
 0x21d   : > { %914 = vperm.xlu1 %1597, %v909_v59  }
 0x220   : > { %v887_v37 = vpop.permute.xlu2 %886 }
 0x224   : > { %v880_v40 = vpop.permute.xlu0 %879 }
 0x225   : > { %935 = vperm.xlu1 %1597, %v930_v60  }
 0x228   : > { %v908_v34 = vpop.permute.xlu2 %907 }
 0x22c   : > { %v901_v48 = vpop.permute.xlu0 %900 }
 0x22d   : > { %956 = vperm.xlu1 %1597, %v951_v61  }
 0x230   : > { %v929_v51 = vpop.permute.xlu2 %928 }
 0x234   : > { %v922_v52 = vpop.permute.xlu0 %921 }
 0x235   : > { %977 = vperm.xlu1 %1597, %v972_v63  }
 0x238   : > { %v950_v45 = vpop.permute.xlu2 %949 }
 0x23c   : > { %v943_v56 = vpop.permute.xlu0 %942 }
 0x23d   : > { %1599 = vset.pattern.permute.xlu1 %v1734_v26 }
 0x25f   : > { %v741_v12 = vpop.xlane.xlu1 %740 }
 0x260   : > { %v752_v14 = vadd.f32 %v750_v4, %v741_v12  ;;  %v2159_v12 = vld [vmem:[%s2281_s4] ss:$0 sm:$0xff] }
 0x262   : > { %v2120_v15 = vmax.f32 %v752_v14, 0.0 }
 0x264   : > { %v1018_v16 = vmul.f32 %v768_v62, %v2120_v15  ;;  %v1019_v38 = vmul.f32 %v775_v3, %v2120_v15  ;;  %v1020_v18 = vmul.f32 %v782_v5, %v2120_v15  ;;  %v1022_v23 = vmul.f32 %v796_v7, %v2120_v15  ;;  %v964_v62 = vpop.permute.xlu0 %963  ;;  %v971_v3 = vpop.permute.xlu2 %970 }
 0x265   : > { %v1021_v25 = vmul.f32 %v789_v9, %v2120_v15  ;;  %v1025_v27 = vmul.f32 %v817_v24, %v2120_v15  ;;  %v1024_v30 = vmul.f32 %v810_v8, %v2120_v15  ;;  %v1023_v31 = vmul.f32 %v803_v6, %v2120_v15 }
 0x266   : > { %1086 = vperm.xlu1 %1599, %v1019_v38   ;;  %1083 = vperm.xlu2 %1598, %v1018_v16   ;;  %v1028_v33 = vmul.f32 %v838_v11, %v2120_v15  ;;  %v1027_v36 = vmul.f32 %v831_v13, %v2120_v15  ;;  %v1031_v42 = vmul.f32 %v859_v28, %v2120_v15 }
 0x267   : > { %1089 = vperm.xlu0 %1600, %v1020_v18   ;;  %v1030_v43 = vmul.f32 %v852_v19, %v2120_v15  ;;  %v1029_v44 = vmul.f32 %v845_v20, %v2120_v15  ;;  %v1034_v0 = vmul.f32 %v880_v40, %v2120_v15  ;;  %v1032_v10 = vmul.f32 %v866_v21, %v2120_v15 }
 0x268   : > { %v1035_v54 = vmul.f32 %v887_v37, %v2120_v15  ;;  %v1044_v46 = vmul.f32 %v950_v45, %v2120_v15  ;;  %v1043_v57 = vmul.f32 %v943_v56, %v2120_v15  ;;  %v1037_v58 = vmul.f32 %v901_v48, %v2120_v15 }
 0x269   : > { %v1038_v60 = vmul.f32 %v908_v34, %v2120_v15  ;;  %v1046_v63 = vmul.f32 %v964_v62, %v2120_v15  ;;  %v1047_v4 = vmul.f32 %v971_v3, %v2120_v15  ;;  %v1040_v5 = vmul.f32 %v922_v52, %v2120_v15 }
 0x26a   : > { %v1041_v7 = vmul.f32 %v929_v51, %v2120_v15 }
 0x26c   : > { %v985_v8 = vpop.permute.xlu0 %984 }
 0x26d   : > { %v1049_v11 = vmul.f32 %v985_v8, %v2120_v15 }
 0x26e   : > { %1095 = vperm.xlu1 %1599, %v1022_v23   ;;  %1092 = vperm.xlu2 %1598, %v1021_v25  }
 0x26f   : > { %1104 = vperm.xlu0 %1600, %v1025_v27  }
 0x276   : > { %1101 = vperm.xlu1 %1599, %v1024_v30   ;;  %1098 = vperm.xlu2 %1598, %v1023_v31  }
 0x277   : > { %v824_v35 = vpop.permute.xlu1 %823  ;;  %1113 = vperm.xlu0 %1600, %v1028_v33  }
 0x278   : > { %v1026_v39 = vmul.f32 %v824_v35, %v2120_v15 }
 0x27e   : > { %1110 = vperm.xlu1 %1599, %v1027_v36   ;;  %1107 = vperm.xlu2 %1598, %v1026_v39  }
 0x27f   : > { %v873_v32 = vpop.permute.xlu1 %872  ;;  %1122 = vperm.xlu0 %1600, %v1031_v42  }
 0x280   : > { %v1033_v49 = vmul.f32 %v873_v32, %v2120_v15 }
 0x286   : > { %1119 = vperm.xlu1 %1599, %v1030_v43   ;;  %1116 = vperm.xlu2 %1598, %v1029_v44  }
 0x287   : > { %v894_v47 = vpop.permute.xlu1 %893  ;;  %1131 = vperm.xlu0 %1600, %v1034_v0  }
 0x288   : > { %v1036_v53 = vmul.f32 %v894_v47, %v2120_v15 }
 0x28e   : > { %1128 = vperm.xlu1 %1599, %v1033_v49   ;;  %1125 = vperm.xlu2 %1598, %v1032_v10  }
 0x28f   : > { %v915_v50 = vpop.permute.xlu1 %914 }
 0x290   : > { %v1039_v9 = vmul.f32 %v915_v50, %v2120_v15 }
 0x296   : > { %1137 = vperm.xlu1 %1599, %v1036_v53   ;;  %1134 = vperm.xlu2 %1598, %v1035_v54  }
 0x297   : > { %v936_v29 = vpop.permute.xlu1 %935 }
 0x298   : > { %v1042_v55 = vmul.f32 %v936_v29, %v2120_v15 }
 0x29a   : > { %1155 = vperm.xlu0 %1600, %v1042_v55  }
 0x29e   : > { %1161 = vperm.xlu1 %1599, %v1044_v46   ;;  %1158 = vperm.xlu2 %1598, %v1043_v57  }
 0x29f   : > { %v957_v59 = vpop.permute.xlu1 %956 }
 0x2a0   : > { %v1045_v61 = vmul.f32 %v957_v59, %v2120_v15 }
 0x2a2   : > { %1140 = vperm.xlu0 %1600, %v1037_v58  }
 0x2a6   : > { %1143 = vperm.xlu1 %1599, %v1038_v60   ;;  %1164 = vperm.xlu2 %1598, %v1045_v61  }
 0x2a7   : > { %v978_v6 = vpop.permute.xlu1 %977 }
 0x2a8   : > { %v1048_v24 = vmul.f32 %v978_v6, %v2120_v15 }
 0x2aa   : > { %1167 = vperm.xlu0 %1600, %v1046_v63  }
 0x2ae   : > { %1170 = vperm.xlu1 %1599, %v1047_v4   ;;  %1146 = vperm.xlu2 %1598, %v1039_v9  }
 0x2b2   : > { %1149 = vperm.xlu0 %1600, %v1040_v5  }
 0x2b6   : > { %1152 = vperm.xlu1 %1599, %v1041_v7   ;;  %1173 = vperm.xlu2 %1598, %v1048_v24  }
 0x2ba   : > { %1176 = vperm.xlu0 %1600, %v1049_v11  }
 0x2be   : > { %1601 = vset.pattern.permute.xlu1 %v1866_v1  ;;  %1602 = vset.pattern.permute.xlu2 %v1886_v17 }
 0x2c0   : > { %v1084_v13 = vpop.permute.xlu2 %1083 }
 0x2c1   : > { %v1178_v17 = vperm.slane %v1084_v13, %v1981_v41 }
 0x2c2   : > { %1603 = vset.pattern.permute.xlu0 %v1894_v22 }
 0x2c6   : > { %1262 = vperm.xlu1 %1601, %v2159_v12  }
 0x2c8   : > { %v1093_v14 = vpop.permute.xlu2 %1092 }
 0x2ce   : > { %1604 = vset.pattern.permute.xlu1 %v1871_v2  ;;  %v1181_v2 = vperm.slane %v1093_v14, %v1981_v41 }
 0x2d0   : > { %v1099_v15 = vpop.permute.xlu2 %1098 }
 0x2d1   : > { %v1183_v30 = vperm.slane %v1099_v15, %v1981_v41 }
 0x2d8   : > { %v1087_v16 = vpop.permute.xlu1 %1086  ;;  %v1108_v23 = vpop.permute.xlu2 %1107 }
 0x2d9   : > { %v1179_v38 = vperm.slane %v1087_v16, %v1981_v41  ;;  %v1090_v1 = vpop.permute.xlu0 %1089  ;;  %v1186_v0 = vperm.slane %v1108_v23, %v1981_v41 }
 0x2da   : > { %v1180_v18 = vperm.slane %v1090_v1, %v1981_v41 }
 0x2db   : > { %v1210_v19 = vsel %vm723_vm3, %v1179_v38, %v1178_v17 }
 0x2dc   : > { %v1211_v22 = vsel %vm725_vm4, %v1180_v18, %v1210_v19 }
 0x2dd   : > { %v1212_v27 = vsel %vm727_vm5, %v1181_v2, %v1211_v22 }
 0x2e0   : > { %v1096_v20 = vpop.permute.xlu1 %1095  ;;  %v1117_v40 = vpop.permute.xlu2 %1116 }
 0x2e1   : > { %v1182_v25 = vperm.slane %v1096_v20, %v1981_v41  ;;  %v1105_v21 = vpop.permute.xlu0 %1104  ;;  %v1189_v50 = vperm.slane %v1117_v40, %v1981_v41 }
 0x2e2   : > { %v1185_v35 = vperm.slane %v1105_v21, %v1981_v41 }
 0x2e3   : > { %v1213_v28 = vsel %vm729_vm6, %v1182_v25, %v1212_v27 }
 0x2e4   : > { %v1214_v36 = vsel %vm731_vm7, %v1183_v30, %v1213_v28 }
 0x2e8   : > { %v1102_v31 = vpop.permute.xlu1 %1101  ;;  %v1126_v48 = vpop.permute.xlu2 %1125 }
 0x2e9   : > { %v1184_v33 = vperm.slane %v1102_v31, %v1981_v41  ;;  %v1114_v32 = vpop.permute.xlu0 %1113  ;;  %v1192_v45 = vperm.slane %v1126_v48, %v1981_v41 }
 0x2ea   : > { %v1188_v47 = vperm.slane %v1114_v32, %v1981_v41 }
 0x2eb   : > { %v1215_v37 = vsel %vm733_vm8, %v1184_v33, %v1214_v36 }
 0x2ec   : > { %v1216_v39 = vsel %vm735_vm9, %v1185_v35, %v1215_v37 }
 0x2ed   : > { %v1243_v42 = vsel %vm1242_vm11, %v1216_v39, 0.0 }
 0x2ee   : > { %1244 = vadd.xlane.f32.xlu2 %v1243_v42 }
 0x2f0   : > { %v1111_v43 = vpop.permute.xlu1 %1110  ;;  %v1135_v46 = vpop.permute.xlu2 %1134 }
 0x2f1   : > { %v1187_v44 = vperm.slane %v1111_v43, %v1981_v41  ;;  %v1123_v52 = vpop.permute.xlu0 %1122  ;;  %v1195_v14 = vperm.slane %v1135_v46, %v1981_v41 }
 0x2f2   : > { %v1191_v29 = vperm.slane %v1123_v52, %v1981_v41 }
 0x2f3   : > { %v1217_v34 = vsel %vm723_vm3, %v1187_v44, %v1186_v0 }
 0x2f4   : > { %v1218_v49 = vsel %vm725_vm4, %v1188_v47, %v1217_v34 }
 0x2f5   : > { %v1219_v53 = vsel %vm727_vm5, %v1189_v50, %v1218_v49 }
 0x2f8   : > { %v1120_v10 = vpop.permute.xlu1 %1119  ;;  %v1159_v63 = vpop.permute.xlu2 %1158 }
 0x2f9   : > { %v1190_v51 = vperm.slane %v1120_v10, %v1981_v41  ;;  %v1132_v60 = vpop.permute.xlu0 %1131  ;;  %v1203_v17 = vperm.slane %v1159_v63, %v1981_v41 }
 0x2fa   : > { %v1194_v24 = vperm.slane %v1132_v60, %v1981_v41 }
 0x2fb   : > { %v1220_v54 = vsel %vm729_vm6, %v1190_v51, %v1219_v53 }
 0x2fc   : > { %v1221_v55 = vsel %vm731_vm7, %v1191_v29, %v1220_v54  ;;  %v1224_v18 = vsel %vm723_vm3, %v1195_v14, %v1194_v24 }
 0x2fd   : > { %v1222_v58 = vsel %vm733_vm8, %v1192_v45, %v1221_v55 }
 0x300   : > { %v1129_v56 = vpop.permute.xlu1 %1128  ;;  %v1165_v5 = vpop.permute.xlu2 %1164 }
 0x301   : > { %v1193_v57 = vperm.slane %v1129_v56, %v1981_v41  ;;  %v1205_v28 = vperm.slane %v1165_v5, %v1981_v41 }
 0x303   : > { %v1223_v59 = vsel %vm735_vm9, %v1193_v57, %v1222_v58 }
 0x304   : > { %v1246_v61 = vsel %vm1242_vm11, %v1223_v59, 0.0 }
 0x305   : > { %1247 = vadd.xlane.f32.xlu1 %v1246_v61 }
 0x308   : > { %v1138_v62 = vpop.permute.xlu1 %1137  ;;  %v1147_v8 = vpop.permute.xlu2 %1146 }
 0x309   : > { %v1196_v11 = vperm.slane %v1138_v62, %v1981_v41  ;;  %v1199_v30 = vperm.slane %v1147_v8, %v1981_v41 }
 0x30b   : > { %v1225_v19 = vsel %vm725_vm4, %v1196_v11, %v1224_v18 }
 0x30c   : > { %v1156_v3 = vpop.permute.xlu0 %1155 }
 0x30d   : > { %v1202_v16 = vperm.slane %v1156_v3, %v1981_v41 }
 0x30f   : > { %v1231_v23 = vsel %vm723_vm3, %v1203_v17, %v1202_v16 }
 0x310   : > { %v1162_v4 = vpop.permute.xlu1 %1161  ;;  %v1174_v35 = vpop.permute.xlu2 %1173 }
 0x311   : > { %v1204_v38 = vperm.slane %v1162_v4, %v1981_v41  ;;  %v1208_v44 = vperm.slane %v1174_v35, %v1981_v41 }
 0x313   : > { %v1232_v25 = vsel %vm725_vm4, %v1204_v38, %v1231_v23 }
 0x314   : > { %v1141_v9 = vpop.permute.xlu0 %1140  ;;  %v1233_v36 = vsel %vm727_vm5, %v1205_v28, %v1232_v25 }
 0x315   : > { %v1197_v15 = vperm.slane %v1141_v9, %v1981_v41 }
 0x317   : > { %v1226_v22 = vsel %vm727_vm5, %v1197_v15, %v1225_v19 }
 0x318   : > { %v1144_v6 = vpop.permute.xlu1 %1143 }
 0x319   : > { %v1198_v1 = vperm.slane %v1144_v6, %v1981_v41 }
 0x31b   : > { %v1227_v2 = vsel %vm729_vm6, %v1198_v1, %v1226_v22 }
 0x31c   : > { %v1168_v7 = vpop.permute.xlu0 %1167  ;;  %v1228_v39 = vsel %vm731_vm7, %v1199_v30, %v1227_v2 }
 0x31d   : > { %v1206_v27 = vperm.slane %v1168_v7, %v1981_v41 }
 0x31e   : > { %1280 = vperm.xlu1 %1604, %v2159_v12  }
 0x31f   : > { %v1234_v40 = vsel %vm729_vm6, %v1206_v27, %v1233_v36 }
 0x320   : > { %v1171_v13 = vpop.permute.xlu1 %1170 }
 0x321   : > { %v1207_v31 = vperm.slane %v1171_v13, %v1981_v41 }
 0x323   : > { %v1235_v32 = vsel %vm731_vm7, %v1207_v31, %v1234_v40 }
 0x324   : > { %v1150_v20 = vpop.permute.xlu0 %1149  ;;  %v1236_v48 = vsel %vm733_vm8, %v1208_v44, %v1235_v32 }
 0x325   : > { %v1200_v21 = vperm.slane %v1150_v20, %v1981_v41 }
 0x326   : > { %1606 = vset.pattern.permute.xlu1 %v1734_v26 }
 0x327   : > { %v1229_v42 = vsel %vm733_vm8, %v1200_v21, %v1228_v39 }
 0x328   : > { %v1153_v33 = vpop.permute.xlu1 %1152 }
 0x329   : > { %v1201_v37 = vperm.slane %v1153_v33, %v1981_v41 }
 0x32b   : > { %v1230_v43 = vsel %vm735_vm9, %v1201_v37, %v1229_v42 }
 0x32c   : > { %v1177_v0 = vpop.permute.xlu0 %1176  ;;  %v1249_v34 = vsel %vm1242_vm11, %v1230_v43, 0.0 }
 0x32d   : > { %v1209_v47 = vperm.slane %v1177_v0, %v1981_v41  ;;  %1250 = vadd.xlane.f32.xlu0 %v1249_v34 }
 0x32f   : > { %v1237_v49 = vsel %vm735_vm9, %v1209_v47, %v1236_v48 }
 0x330   : > { %v1252_v10 = vsel %vm1242_vm11, %v1237_v49, 0.0 }
 0x331   : > { %1253 = vadd.xlane.f32.xlu2 %v1252_v10 }
 0x338   : > { %v1263_v50 = vpop.permute.xlu1 %1262 }
 0x341   : > { %1274 = vperm.xlu0 %1603, %v2159_v12  }
 0x349   : > { %1268 = vperm.xlu2 %1602, %v2159_v12   ;;  %1607 = vset.pattern.permute.xlu0 %v1734_v26 }
 0x351   : > { %1605 = vset.pattern.permute.xlu2 %v1734_v26 }
 0x361   : > { %v1245_v51 = vpop.xlane.xlu2 %1244 }
 0x362   : > { %v1286_v52 = vadd.f32 %v1263_v50, %v1245_v51  ;;  %v1626_v51 = vld [vmem:[%s1859_s25] sm:$0xff] }
 0x364   : > { %v1500_v41 = vmul.f32 -1.442695, %v1286_v52 }
 0x366   : > { %1610 = vpow2.f32 %v1500_v41  ;;  %v1627_v41 = vld [vmem:[%s1859_s25 + $0x8] sm:$0xff] }
 0x36c   : > { %v1611_v53 = vpop.eup %1610 }
 0x36d   : > { %v1302_v54 = vadd.f32 1.0, %v1611_v53 }
 0x36f   : > { %1612 = vrcp.f32 %v1302_v54  ;;  %v1317_v56 = vand.u32 2147483648, %v1302_v54  ;;  %v1315_v57 = vand.u32 2147483647, %v1302_v54  ;;  %vm1311_vm13 = vweird.f32 %v1302_v54 }
 0x371   : > { %v1318_v58 = vor.u32 1.1754944e-38, %v1317_v56  ;;  %vm1316_vm15 = vcmp.eq.f32.partialorder %v1315_v57, 8.507059e+37  ;;  %v1630_v57 = vld [vmem:[%s1859_s25 + $0x10] sm:$0xff] }
 0x375   : > { %v1613_v29 = vpop.eup %1612 }
 0x376   : > { %v1307_v55 = vmul.f32 %v1613_v29, %v1302_v54  ;;  %vm1312_vm12 = vweird.f32 %v1613_v29 }
 0x377   : > { %vm1313_vm14 = vmor %vm1311_vm13, %vm1312_vm12 }
 0x378   : > { %v1308_v45 = vsub.f32 1.0, %v1307_v55  ;;  %v1248_v60 = vpop.xlane.xlu1 %1247 }
 0x37a   : > { %v1309_v46 = vmul.f32 %v1613_v29, %v1308_v45  ;;  %v1629_v45 = vld [vmem:[%s1859_s25 + $0x28] sm:$0xff] }
 0x37c   : > { %v1310_v12 = vadd.f32 %v1613_v29, %v1309_v46 }
 0x37e   : > { %v1314_v26 = vsel %vm1313_vm14, %v1613_v29, %v1310_v12  ;;  %v1628_v29 = vld [vmem:[%s1859_s25 + $0x20] sm:$0xff] }
 0x37f   : > { %v1319_v59 = vsel %vm1316_vm15, %v1318_v58, %v1314_v26  ;;  %v1631_v58 = vld [vmem:[%s1859_s25 + $0x18] sm:$0xff] }
 0x380   : > { %1368 = vperm.xlu2 %1605, %v1319_v59  }
 0x390   : > { %v1281_v61 = vpop.permute.xlu1 %1280 }
 0x3a0   : > { %v1251_v4 = vpop.xlane.xlu0 %1250 }
 0x3a4   : > { %v1254_v62 = vpop.xlane.xlu2 %1253 }
 0x3a5   : > { %v1289_v63 = vadd.f32 %v1281_v61, %v1254_v62  ;;  %v1633_v62 = vld [vmem:[%s1859_s25 + $0x38] sm:$0xff] }
 0x3a7   : > { %v1503_v3 = vmul.f32 -1.442695, %v1289_v63 }
 0x3a9   : > { %1614 = vpow2.f32 %v1503_v3 }
 0x3ac   : > { %v1269_v9 = vpop.permute.xlu2 %1268 }
 0x3ad   : > { %v1287_v5 = vadd.f32 %v1269_v9, %v1248_v60  ;;  %v1632_v60 = vld [vmem:[%s1859_s25 + $0x30] sm:$0xff] }
 0x3af   : > { %v1615_v6 = vpop.eup %1614  ;;  %v1501_v7 = vmul.f32 -1.442695, %v1287_v5 }
 0x3b0   : > { %v1305_v24 = vadd.f32 1.0, %v1615_v6 }
 0x3b1   : > { %1616 = vpow2.f32 %v1501_v7 }
 0x3b2   : > { %1618 = vrcp.f32 %v1305_v24  ;;  %v1362_v32 = vand.u32 2147483648, %v1305_v24  ;;  %vm1356_vm6 = vweird.f32 %v1305_v24  ;;  %v1360_v43 = vand.u32 2147483647, %v1305_v24 }
 0x3b3   : > { %v1275_v8 = vpop.permute.xlu0 %1274 }
 0x3b4   : > { %v1288_v11 = vadd.f32 %v1275_v8, %v1251_v4  ;;  %v1363_v48 = vor.u32 1.1754944e-38, %v1362_v32  ;;  %vm1361_vm11 = vcmp.eq.f32.partialorder %v1360_v43, 8.507059e+37 }
 0x3b6   : > { %v1502_v13 = vmul.f32 -1.442695, %v1288_v11 }
 0x3b7   : > { %v1617_v14 = vpop.eup %1616 }
 0x3b8   : > { %v1303_v16 = vadd.f32 1.0, %v1617_v14  ;;  %1620 = vpow2.f32 %v1502_v13  ;;  %v1619_v15 = vpop.eup %1618 }
 0x3b9   : > { %v1352_v17 = vmul.f32 %v1619_v15, %v1305_v24  ;;  %vm1357_vm4 = vweird.f32 %v1619_v15 }
 0x3ba   : > { %1622 = vrcp.f32 %v1303_v16  ;;  %v1332_v22 = vand.u32 2147483648, %v1303_v16  ;;  %v1330_v2 = vand.u32 2147483647, %v1303_v16  ;;  %vm1326_vm1 = vweird.f32 %v1303_v16  ;;  %vm1358_vm8 = vmor %vm1356_vm6, %vm1357_vm4 }
 0x3bb   : > { %v1353_v23 = vsub.f32 1.0, %v1352_v17 }
 0x3bc   : > { %v1333_v30 = vor.u32 1.1754944e-38, %v1332_v22  ;;  %vm1331_vm3 = vcmp.eq.f32.partialorder %v1330_v2, 8.507059e+37 }
 0x3bd   : > { %v1354_v28 = vmul.f32 %v1619_v15, %v1353_v23 }
 0x3be   : > { %v1621_v38 = vpop.eup %1620 }
 0x3bf   : > { %v1304_v1 = vadd.f32 1.0, %v1621_v38  ;;  %v1355_v39 = vadd.f32 %v1619_v15, %v1354_v28 }
 0x3c0   : > { %v1623_v18 = vpop.eup %1622 }
 0x3c1   : > { %1624 = vrcp.f32 %v1304_v1  ;;  %v1322_v19 = vmul.f32 %v1623_v18, %v1303_v16  ;;  %vm1327_vm0 = vweird.f32 %v1623_v18  ;;  %v1347_v37 = vand.u32 2147483648, %v1304_v1 }
 0x3c2   : > { %vm1328_vm2 = vmor %vm1326_vm1, %vm1327_vm0  ;;  %v1345_v42 = vand.u32 2147483647, %v1304_v1  ;;  %vm1341_vm7 = vweird.f32 %v1304_v1  ;;  %v1359_v34 = vsel %vm1358_vm8, %v1619_v15, %v1355_v39 }
 0x3c3   : > { %v1323_v20 = vsub.f32 1.0, %v1322_v19  ;;  %v1348_v0 = vor.u32 1.1754944e-38, %v1347_v37  ;;  %v1364_v10 = vsel %vm1361_vm11, %v1363_v48, %v1359_v34 }
 0x3c4   : > { %vm1346_vm10 = vcmp.eq.f32.partialorder %v1345_v42, 8.507059e+37 }
 0x3c5   : > { %v1324_v25 = vmul.f32 %v1623_v18, %v1323_v20 }
 0x3c7   : > { %v1625_v27 = vpop.eup %1624  ;;  %v1325_v21 = vadd.f32 %v1623_v18, %v1324_v25 }
 0x3c8   : > { %v1337_v31 = vmul.f32 %v1625_v27, %v1304_v1  ;;  %vm1342_vm5 = vweird.f32 %v1625_v27 }
 0x3c9   : > { %v1329_v33 = vsel %vm1328_vm2, %v1623_v18, %v1325_v21  ;;  %vm1343_vm9 = vmor %vm1341_vm7, %vm1342_vm5 }
 0x3ca   : > { %v1334_v35 = vsel %vm1331_vm3, %v1333_v30, %v1329_v33  ;;  %v1338_v36 = vsub.f32 1.0, %v1337_v31 }
 0x3cb   : > { %1373 = vperm.xlu1 %1606, %v1334_v35  }
 0x3cc   : > { %v1339_v40 = vmul.f32 %v1625_v27, %v1338_v36 }
 0x3ce   : > { %v1340_v44 = vadd.f32 %v1625_v27, %v1339_v40 }
 0x3d0   : > { %v1344_v47 = vsel %vm1343_vm9, %v1625_v27, %v1340_v44 }
 0x3d1   : > { %v1349_v49 = vsel %vm1346_vm10, %v1348_v0, %v1344_v47 }
 0x3d2   : > { %1378 = vperm.xlu2 %1605, %v1349_v49  }
 0x3d3   : > { %1383 = vperm.xlu1 %1606, %v1364_v10  }
 0x3da   : > { %v1369_v50 = vpop.permute.xlu2 %1368 }
 0x3db   : > { %v1386_v52 = vmul.f32 %v1626_v51, %v1369_v50  ;;  %v1387_v53 = vmul.f32 %v1627_v41, %v1369_v50 }
 0x3dd   : > { %1394 = vst [vmem:[%s244_s13] sm:$0xff] %v1386_v52 }
 0x3de   : > { %1395 = vst [vmem:[%s244_s13 + $0x8] sm:$0xff] %v1387_v53 }
 0x42c   : > { %v1379_v54 = vpop.permute.xlu2 %1378 }
 0x42d   : > { %v1390_v55 = vmul.f32 %v1628_v29, %v1379_v54  ;;  %v1391_v56 = vmul.f32 %v1629_v45, %v1379_v54 }
 0x42f   : > { %1398 = vst [vmem:[%s244_s13 + $0x20] sm:$0xff] %v1390_v55 }
 0x430   : > { %1399 = vst [vmem:[%s244_s13 + $0x28] sm:$0xff] %v1391_v56 }
 0x43d   : > { %v1374_v46 = vpop.permute.xlu1 %1373 }
 0x43e   : > { %v1388_v12 = vmul.f32 %v1630_v57, %v1374_v46  ;;  %v1389_v26 = vmul.f32 %v1631_v58, %v1374_v46 }
 0x440   : > { %1396 = vst [vmem:[%s244_s13 + $0x10] sm:$0xff] %v1388_v12 }
 0x441   : > { %1397 = vst [vmem:[%s244_s13 + $0x18] sm:$0xff] %v1389_v26 }
 0x445   : > { %v1384_v59 = vpop.permute.xlu1 %1383 }
 0x446   : > { %v1392_v61 = vmul.f32 %v1632_v60, %v1384_v59  ;;  %v1393_v63 = vmul.f32 %v1633_v62, %v1384_v59 }
 0x448   : > { %1400 = vst [vmem:[%s244_s13 + $0x30] sm:$0xff] %v1392_v61 }
 0x449   : > { %1401 = vst [vmem:[%s244_s13 + $0x38] sm:$0xff] %v1393_v63 }
 0x44a   : > { %1691 = shalt.err (!%p1688_p4)
}
 0x44b   : > { %s1735_s12 = smov 256   ;;  %s1736_s25 = smov 16  }
 0x44c   : > { %1513 = dma.vmem_to_hbm [thread:$0]  (%p1817_p11), %s1416_s26, 1024, %s1418_s8, %s1403_s28, %s1735_s12, %s1735_s12, %s1736_s25  }
 0x44d PF: > { %s1432_s13 = sand.u32 1, %s1718_s18   ;;  %p2288_p7 = scmp.ge.s32.totalorder %s1730_s21, 2 }
 0x44e   : > { %s1433_s15 = scalar_lea.sflag [#allocation4], %s1432_s13 }
 0x44f   : > { %p1520_p5 = pnand %p2288_p7, %p1821_p12 }
 0x451   : > { %p1521_p8 = pneg %p1520_p5 }
 0x453   : > { %1713 = dma.done.wait (%p1521_p8), %s1433_s15, 1024  }
 0x454   : > { %1715 = vsyncadd (%p1521_p8), %s1433_s15, 4294966272  ;;  %p18_p10 = scmp.ge.s32.totalorder %s1792_s24, 4   ;;  %s2289_s18 = smov %s1722_s19 }
 0x455   : > { %s2290_s19 = smov %s1726_s20  ;;  %s2291_s20 = smov %s1804_s27 }
 0x456   : > { %s2292_s21 = smov %s1792_s24  ;;  %20 = sbr.rel (!%p18_p10) target bundleno = 5 (0x5), region = 85 }
 0x45b   :  { %1439 = vsyncpa [#allocation3], 1 }
 0x45c   :  { %1441 = vsyncpa [#allocation3 + $0x1], 1 }
 0x45d   :  { %1442 = vsyncpa [#allocation4], 1 }
 0x45e   :  { %1444 = vsyncpa [#allocation4 + $0x1], 1 }

</bundles_post_ra>
